<compile_context>
chip_gen: v7x
topology: tpu7x:2x2x1
jax: 0.10.0
libtpu: 0.0.40
codegen_flags: <defaults>
</compile_context>

<pallas_src>
import functools

import numpy as np
import jax
import jax.numpy as jnp
from jax.experimental import pallas as pl
from jax.experimental.pallas import tpu as pltpu

_MAJOR = [(0, 4, 7), (5, 9, 0), (7, 11, 2), (0, 4, 7)]
_MINOR = [(0, 3, 7), (5, 8, 0), (7, 10, 2), (0, 3, 7)]
_TEMPLATES = tuple(_MAJOR) + tuple(_MINOR)   # 8 chords, each with 3 distinct pitch classes


def _chord_loss_kernel(notes_ref, w_ref, sel_ref, gw_ref, out_ref, *,
                       rows, c, bt, n_windows):
    """One batch block: `bt` (pred, targ) pairs folded into `rows = bt*n_pad` rows.

    notes_ref: (2*rows, c) int32 -- rows [0, rows) = pred chords (pair-major),
                                    rows [rows, 2*rows) = targ chords.
    w_ref:     (12, 9) f32       -- template pitch-class columns (+ ones column 8).
    sel_ref:   (5, 8)  f32       -- rows 0..3: window-position lane masks, row 4: major-lane mask.
    gw_ref:    (rows, 2*bt) f32  -- per-row weights: cols [0,bt) similarity, cols [bt,2bt) penalty.
    out_ref:   (1, bt) f32       -- lane-dense per-pair losses for this block.
    """
    R = rows
    w = w_ref[...]                                                  # (12, 9)

    notes = notes_ref[...] % 12                                     # (2R, c)
    lane12 = jax.lax.broadcasted_iota(jnp.int32, (2 * R, 12), 1)
    pc_b = notes[:, 0:1] == lane12
    for j in range(1, c):
        pc_b = jnp.logical_or(pc_b, notes[:, j:j + 1] == lane12)
    pc = pc_b.astype(jnp.float32)                                   # (2R, 12) multi-hot

    # One MXU pass over pred+targ rows: 8 template intersections + distinct-pc count.
    r1 = jnp.dot(pc, w, preferred_element_type=jnp.float32)         # (2R, 9)
    s_pred = r1[0:R, 8:9]                                           # (R, 1)
    s_targ = r1[R:2 * R, 8:9]                                       # (R, 1)

    pc_prod = pc[0:R, :] * pc[R:2 * R, :]                           # pred ∩ targ multi-hot
    inter_pt = jnp.dot(pc_prod, w, preferred_element_type=jnp.float32)[:, 8:9]  # (R, 1)

    # chord_similarity: with pd = (pc_pred+eps)/sum(pc_pred+eps) (likewise td),
    #   sum(pd*td) = (inter + eps*(s_p+s_t) + 12 eps^2) / ((s_p+12 eps)*(s_t+12 eps))
    eps = 1e-6
    num = inter_pt + eps * (s_pred + s_targ) + 12.0 * eps * eps
    den = (s_pred + 12.0 * eps) * (s_targ + 12.0 * eps)
    sim = jnp.clip(num / den, 0.0, 1.0)                             # (R, 1)

    gw = gw_ref[...]                                                # (R, 2*bt)
    lossd = sim * gw[:, 0:bt]                                       # (R, bt)

    if n_windows > 0:
        sel = sel_ref[...]                                          # (5, 8)
        # 8 extra (finite, later-masked) rows so the j-shifted slices stay in bounds.
        re = R + 8
        inters_e = r1[0:re, 0:8]
        s_pred_e = r1[0:re, 8:9]
        union_e = s_pred_e + 3.0 - inters_e                         # templates have 3 pcs
        dist_e = 1.0 - inters_e / (union_e + 1e-8)                  # (R+8, 8) Jaccard distance
        # window r, position j uses dist[r+j, j] (major) and dist[r+j, j+4] (minor)
        acc = dist_e[0:R, :] * sel[0:1, :]
        for j in range(1, 4):
            acc = acc + dist_e[j:j + R, :] * sel[j:j + 1, :]        # (R, 8)
        maj = jnp.sum(acc * sel[4:5, :], axis=-1, keepdims=True)    # (R, 1)
        tot = jnp.sum(acc, axis=-1, keepdims=True)                  # (R, 1)
        win = jnp.minimum(maj, tot - maj) * 0.25                    # (R, 1)
        lossd = lossd + win * gw[:, bt:2 * bt]

    # lane-dense per-pair losses: membership/weights already baked into gw.
    out_ref[...] = 1.0 + jnp.sum(lossd, axis=0, keepdims=True)      # (1, bt)


def _pad_chord_width(x, c):
    """Pad chord width by repeating the last note (pitch-class SET unchanged)."""
    cur = x.shape[-1]
    if cur == c:
        return x
    reps = jnp.broadcast_to(x[..., -1:], x.shape[:-1] + (c - cur,))
    return jnp.concatenate([x, reps], axis=-1)


def chord_progression_loss_batched(chord_predictions, chord_targets, *, batch_tile=128):
    """ChordProgressionLoss over a leading batch of (pred, targ) pairs.

    chord_predictions: (B, n_p, c_p) int notes; chord_targets: (B, n_t, c_t).
    Returns (B,) float32 losses; one pallas_call, B_TILE pairs per grid step."""
    preds = jnp.asarray(chord_predictions, jnp.int32)
    targs = jnp.asarray(chord_targets, jnp.int32)
    B = int(preds.shape[0])
    if preds.size == 0 or targs.size == 0:
        return jnp.zeros((B,), jnp.float32)

    n = int(min(preds.shape[1], targs.shape[1]))
    if n == 0:
        return jnp.zeros((B,), jnp.float32)
    c_pred = int(preds.shape[2])
    c = int(max(c_pred, targs.shape[2]))
    preds = _pad_chord_width(preds[:, :n], c)
    targs = _pad_chord_width(targs[:, :n], c)

    # progression_penalty needs pred.nelement() >= 4 and at least one 4-chord window
    n_windows = n - 3 if (n * c_pred >= 4 and n - 3 > 0) else 0

    n_pad = -(-n // 8) * 8                     # rows per pair, sublane aligned
    bt = max(1, min(B, batch_tile))            # pairs per grid step
    nb = -(-B // bt)                           # grid steps
    b_pad = nb * bt
    rows = bt * n_pad

    def prep(x):                               # (B, n, c) -> (nb, rows, c), pair-major rows
        x = jnp.pad(x, ((0, b_pad - B), (0, n_pad - n), (0, 0)))
        return x.reshape(nb, rows, c)

    packed = jnp.concatenate([prep(preds), prep(targs)], axis=1)    # (nb, 2*rows, c)

    # --- hoisted constant operands (fetched once, resident across grid steps) ---
    w = np.zeros((12, 9), np.float32)          # template pitch classes + ones column
    for col, chord in enumerate(_TEMPLATES):
        for note in {x % 12 for x in chord}:
            w[note, col] = 1.0
    w[:, 8] = 1.0

    sel = np.zeros((5, 8), np.float32)         # window-position / major-lane masks
    for j in range(4):
        sel[j, j] = 1.0
        sel[j, j + 4] = 1.0
    sel[4, 0:4] = 1.0

    row_b = np.arange(rows) // n_pad           # pair owning each row
    row_i = np.arange(rows) % n_pad            # position inside the pair
    member = (row_b[:, None] == np.arange(bt)[None, :]).astype(np.float32)   # (rows, bt)
    gw = np.zeros((rows, 2 * bt), np.float32)
    gw[:, 0:bt] = member * (row_i[:, None] < n).astype(np.float32) * (-1.0 / n)
    if n_windows > 0:
        gw[:, bt:] = member * (row_i[:, None] < n_windows).astype(np.float32) * (0.5 / n_windows)

    kernel = functools.partial(_chord_loss_kernel, rows=rows, c=c, bt=bt,
                               n_windows=n_windows)
    out = pl.pallas_call(
        kernel,
        grid=(nb,),
        out_shape=jax.ShapeDtypeStruct((nb, 1, bt), jnp.float32),
        in_specs=[
            pl.BlockSpec((None, 2 * rows, c), lambda g: (g, 0, 0)),   # packed notes
            pl.BlockSpec((12, 9), lambda g: (0, 0)),                  # templates (resident)
            pl.BlockSpec((5, 8), lambda g: (0, 0)),                   # lane masks (resident)
            pl.BlockSpec((rows, 2 * bt), lambda g: (0, 0)),           # per-row weights (resident)
        ],
        out_specs=pl.BlockSpec((None, 1, bt), lambda g: (g, 0, 0)),   # lane-dense losses
        compiler_params=pltpu.CompilerParams(
            dimension_semantics=("parallel",)),   # batch blocks split across v7x's 2 TCs
    )(packed, jnp.asarray(w), jnp.asarray(sel), jnp.asarray(gw))
    return out.reshape(nb * bt)[:B]


def chord_progression_loss(chord_predictions, chord_targets):
    """Pallas equivalent of ChordProgressionLoss.forward((pred, target))."""
    if chord_predictions.size == 0 or chord_targets.size == 0:
        return jnp.float32(0.0)
    pred = jnp.asarray(chord_predictions, jnp.int32)[None]
    targ = jnp.asarray(chord_targets, jnp.int32)[None]
    return chord_progression_loss_batched(pred, targ)[0]


def _reference_loss(pred, targ):
    """Pure numpy re-implementation of the PyTorch module for validation."""
    n = min(len(pred), len(targ))
    pred = np.asarray(pred)[:n]
    targ = np.asarray(targ)[:n]

    pd = np.zeros((n, 12), np.float64)
    td = np.zeros((n, 12), np.float64)
    for i in range(n):
        pd[i, np.unique(pred[i] % 12)] = 1.0
        td[i, np.unique(targ[i] % 12)] = 1.0
    eps = 1e-6
    pd += eps
    td += eps
    pd /= pd.sum(-1, keepdims=True)
    td /= td.sum(-1, keepdims=True)
    sim = np.clip((pd * td).sum(-1), 0.0, 1.0)
    sim_loss = 1.0 - sim.mean()

    penalties = []
    if pred.size >= 4:
        for i in range(n - 3):
            window = pred[i:i + 4] % 12
            dists = []
            for tmpl in (_MAJOR, _MINOR):
                d = 0.0
                for j in range(4):
                    pset = set(window[j].tolist())
                    tset = set(tmpl[j])
                    inter = len(pset & tset)
                    union = len(pset | tset)
                    d += 1.0 - inter / (union + 1e-8)
                dists.append(d / 4.0)
            penalties.append(min(dists))
    pen = float(np.mean(penalties)) if penalties else 0.0
    return float(sim_loss + 0.5 * pen)


if __name__ == "__main__":
    key = jax.random.PRNGKey(0)
    kp, kt = jax.random.split(key)
    # chord sequences of MIDI-like note numbers; different lengths exercise min_len
    chord_predictions = jax.random.randint(kp, (10, 3), 0, 24, dtype=jnp.int32)
    chord_targets = jax.random.randint(kt, (8, 3), 0, 24, dtype=jnp.int32)

    loss = chord_progression_loss(chord_predictions, chord_targets)
    jax.block_until_ready(loss)
    ref = _reference_loss(np.asarray(chord_predictions), np.asarray(chord_targets))
    assert abs(float(loss) - ref) < 1e-5, (float(loss), ref)

    # batched path: many (pred, targ) pairs per grid step, lane-dense output block
    kbp, kbt = jax.random.split(jax.random.PRNGKey(1))
    preds_b = jax.random.randint(kbp, (4, 10, 3), 0, 24, dtype=jnp.int32)
    targs_b = jax.random.randint(kbt, (4, 10, 3), 0, 24, dtype=jnp.int32)
    losses = chord_progression_loss_batched(preds_b, targs_b)
    jax.block_until_ready(losses)
    for i in range(4):
        ref_i = _reference_loss(np.asarray(preds_b[i]), np.asarray(targs_b[i]))
        assert abs(float(losses[i]) - ref_i) < 1e-5, (i, float(losses[i]), ref_i)

    print("KERNEL_OK")
</pallas_src>

<mosaic_0001>
module attributes {stable_mosaic.version = 11 : i64} {
  func.func @_chord_loss_kernel(%arg0: i32, %arg1: memref<1x16x3xi32, #tpu.memory_space<vmem>>, %arg2: memref<12x9xf32, #tpu.memory_space<vmem>>, %arg3: memref<5x8xf32, #tpu.memory_space<vmem>>, %arg4: memref<8x2xf32, #tpu.memory_space<vmem>>, %arg5: memref<1x1x1xf32, #tpu.memory_space<vmem>>) attributes {dimension_semantics = [#tpu.dimension_semantics<parallel>], iteration_bounds = array<i64: 1>, scalar_prefetch = 0 : i64, scratch_operands = 0 : i64, tpu.core_type = #tpu.core_type<tc>, window_params = [{transform_indices = @transform_0, window_bounds = array<i64: 1, 16, 3>}, {pipeline_mode = #tpu.pipeline_mode<synchronous>, transform_indices = @transform_1, window_bounds = array<i64: 12, 9>}, {pipeline_mode = #tpu.pipeline_mode<synchronous>, transform_indices = @transform_2, window_bounds = array<i64: 5, 8>}, {pipeline_mode = #tpu.pipeline_mode<synchronous>, transform_indices = @transform_3, window_bounds = array<i64: 8, 2>}, {transform_indices = @transform_4, window_bounds = array<i64: 1, 1, 1>}]} {
    %c0 = arith.constant 0 : index
    %c0_0 = arith.constant 0 : index
    %0 = vector.load %arg2[%c0, %c0_0] : memref<12x9xf32, #tpu.memory_space<vmem>>, vector<12x9xf32>
    %c0_1 = arith.constant 0 : index
    %c0_2 = arith.constant 0 : index
    %c0_3 = arith.constant 0 : index
    %1 = vector.load %arg1[%c0_1, %c0_2, %c0_3] : memref<1x16x3xi32, #tpu.memory_space<vmem>>, vector<1x16x3xi32>
    %2 = vector.shape_cast %1 : vector<1x16x3xi32> to vector<16x3xi32>
    %c12_i32 = arith.constant 12 : i32
    %c0_i32 = arith.constant 0 : i32
    %3 = arith.cmpi eq, %c12_i32, %c0_i32 : i32
    %c1_i32 = arith.constant 1 : i32
    %4 = arith.select %3, %c1_i32, %c12_i32 : i32
    %5 = vector.broadcast %4 : i32 to vector<16x3xi32>
    %6 = arith.remsi %2, %5 : vector<16x3xi32>
    %c0_i32_4 = arith.constant 0 : i32
    %7 = vector.broadcast %c0_i32_4 : i32 to vector<16x3xi32>
    %8 = arith.cmpi ne, %6, %7 : vector<16x3xi32>
    %c0_i32_5 = arith.constant 0 : i32
    %9 = vector.broadcast %c0_i32_5 : i32 to vector<16x3xi32>
    %10 = arith.cmpi slt, %6, %9 : vector<16x3xi32>
    %c0_i32_6 = arith.constant 0 : i32
    %11 = arith.cmpi slt, %4, %c0_i32_6 : i32
    %12 = vector.broadcast %11 : i1 to vector<16x3xi1>
    %13 = vector.broadcast %12 : vector<16x3xi1> to vector<16x3xi1>
    %14 = arith.xori %10, %13 : vector<16x3xi1>
    %15 = arith.andi %14, %8 : vector<16x3xi1>
    %16 = vector.broadcast %4 : i32 to vector<16x3xi32>
    %17 = arith.addi %6, %16 : vector<16x3xi32>
    %18 = arith.select %15, %17, %6 : vector<16x3xi1>, vector<16x3xi32>
    %19 = tpu.iota {dimensions = array<i32: 1>} : vector<16x12xi32>
    %20 = vector.extract_strided_slice %18 {offsets = [0, 0], sizes = [16, 1], strides = [1, 1]} : vector<16x3xi32> to vector<16x1xi32>
    %21 = vector.broadcast %20 : vector<16x1xi32> to vector<16x12xi32>
    %22 = arith.cmpi eq, %21, %19 : vector<16x12xi32>
    %23 = vector.extract_strided_slice %18 {offsets = [0, 1], sizes = [16, 1], strides = [1, 1]} : vector<16x3xi32> to vector<16x1xi32>
    %24 = vector.broadcast %23 : vector<16x1xi32> to vector<16x12xi32>
    %25 = arith.cmpi eq, %24, %19 : vector<16x12xi32>
    %26 = arith.ori %22, %25 : vector<16x12xi1>
    %27 = vector.extract_strided_slice %18 {offsets = [0, 2], sizes = [16, 1], strides = [1, 1]} : vector<16x3xi32> to vector<16x1xi32>
    %28 = vector.broadcast %27 : vector<16x1xi32> to vector<16x12xi32>
    %29 = arith.cmpi eq, %28, %19 : vector<16x12xi32>
    %30 = arith.ori %26, %29 : vector<16x12xi1>
    %31 = arith.extui %30 : vector<16x12xi1> to vector<16x12xi32>
    %32 = arith.sitofp %31 : vector<16x12xi32> to vector<16x12xf32>
    %cst = arith.constant dense<0.000000e+00> : vector<16x9xf32>
    %33 = tpu.matmul %32, %0, %cst {dimension_numbers = #tpu.dot_dimension_numbers<[1], [0], [0], [1], [0, 0, 1, 1], [], []>} : vector<16x12xf32>, vector<12x9xf32>, vector<16x9xf32> -> vector<16x9xf32>
    %34 = vector.extract_strided_slice %33 {offsets = [0, 8], sizes = [8, 1], strides = [1, 1]} : vector<16x9xf32> to vector<8x1xf32>
    %35 = vector.extract_strided_slice %33 {offsets = [8, 8], sizes = [8, 1], strides = [1, 1]} : vector<16x9xf32> to vector<8x1xf32>
    %36 = vector.extract_strided_slice %32 {offsets = [0, 0], sizes = [8, 12], strides = [1, 1]} : vector<16x12xf32> to vector<8x12xf32>
    %37 = vector.extract_strided_slice %32 {offsets = [8, 0], sizes = [8, 12], strides = [1, 1]} : vector<16x12xf32> to vector<8x12xf32>
    %38 = arith.mulf %36, %37 : vector<8x12xf32>
    %cst_7 = arith.constant dense<0.000000e+00> : vector<8x9xf32>
    %39 = tpu.matmul %38, %0, %cst_7 {dimension_numbers = #tpu.dot_dimension_numbers<[1], [0], [0], [1], [0, 0, 1, 1], [], []>} : vector<8x12xf32>, vector<12x9xf32>, vector<8x9xf32> -> vector<8x9xf32>
    %40 = vector.extract_strided_slice %39 {offsets = [0, 8], sizes = [8, 1], strides = [1, 1]} : vector<8x9xf32> to vector<8x1xf32>
    %41 = arith.addf %34, %35 : vector<8x1xf32>
    %cst_8 = arith.constant 9.99999997E-7 : f32
    %42 = vector.broadcast %cst_8 : f32 to vector<8x1xf32>
    %43 = arith.mulf %42, %41 : vector<8x1xf32>
    %44 = arith.addf %40, %43 : vector<8x1xf32>
    %cst_9 = arith.constant 1.200000e-11 : f32
    %45 = vector.broadcast %cst_9 : f32 to vector<8x1xf32>
    %46 = arith.addf %44, %45 : vector<8x1xf32>
    %cst_10 = arith.constant 1.200000e-05 : f32
    %47 = vector.broadcast %cst_10 : f32 to vector<8x1xf32>
    %48 = arith.addf %34, %47 : vector<8x1xf32>
    %cst_11 = arith.constant 1.200000e-05 : f32
    %49 = vector.broadcast %cst_11 : f32 to vector<8x1xf32>
    %50 = arith.addf %35, %49 : vector<8x1xf32>
    %51 = arith.mulf %48, %50 : vector<8x1xf32>
    %52 = arith.divf %46, %51 : vector<8x1xf32>
    %cst_12 = arith.constant 0.000000e+00 : f32
    %cst_13 = arith.constant 1.000000e+00 : f32
    %53 = vector.broadcast %cst_12 : f32 to vector<8x1xf32>
    %54 = arith.maximumf %53, %52 : vector<8x1xf32>
    %55 = vector.broadcast %cst_13 : f32 to vector<8x1xf32>
    %56 = arith.minimumf %55, %54 : vector<8x1xf32>
    %c0_14 = arith.constant 0 : index
    %c0_15 = arith.constant 0 : index
    %57 = vector.load %arg4[%c0_14, %c0_15] : memref<8x2xf32, #tpu.memory_space<vmem>>, vector<8x2xf32>
    %58 = vector.extract_strided_slice %57 {offsets = [0, 0], sizes = [8, 1], strides = [1, 1]} : vector<8x2xf32> to vector<8x1xf32>
    %59 = arith.mulf %56, %58 : vector<8x1xf32>
    %c0_16 = arith.constant 0 : index
    %c0_17 = arith.constant 0 : index
    %60 = vector.load %arg3[%c0_16, %c0_17] : memref<5x8xf32, #tpu.memory_space<vmem>>, vector<5x8xf32>
    %61 = vector.extract_strided_slice %33 {offsets = [0, 0], sizes = [16, 8], strides = [1, 1]} : vector<16x9xf32> to vector<16x8xf32>
    %62 = vector.extract_strided_slice %33 {offsets = [0, 8], sizes = [16, 1], strides = [1, 1]} : vector<16x9xf32> to vector<16x1xf32>
    %cst_18 = arith.constant 3.000000e+00 : f32
    %63 = vector.broadcast %cst_18 : f32 to vector<16x1xf32>
    %64 = arith.addf %62, %63 : vector<16x1xf32>
    %65 = vector.broadcast %64 : vector<16x1xf32> to vector<16x8xf32>
    %66 = arith.subf %65, %61 : vector<16x8xf32>
    %cst_19 = arith.constant 9.99999993E-9 : f32
    %67 = vector.broadcast %cst_19 : f32 to vector<16x8xf32>
    %68 = arith.addf %66, %67 : vector<16x8xf32>
    %69 = arith.divf %61, %68 : vector<16x8xf32>
    %cst_20 = arith.constant 1.000000e+00 : f32
    %70 = vector.broadcast %cst_20 : f32 to vector<16x8xf32>
    %71 = arith.subf %70, %69 : vector<16x8xf32>
    %72 = vector.extract_strided_slice %71 {offsets = [0, 0], sizes = [8, 8], strides = [1, 1]} : vector<16x8xf32> to vector<8x8xf32>
    %73 = vector.extract_strided_slice %60 {offsets = [0, 0], sizes = [1, 8], strides = [1, 1]} : vector<5x8xf32> to vector<1x8xf32>
    %74 = vector.broadcast %73 : vector<1x8xf32> to vector<8x8xf32>
    %75 = arith.mulf %72, %74 : vector<8x8xf32>
    %76 = vector.extract_strided_slice %71 {offsets = [1, 0], sizes = [8, 8], strides = [1, 1]} : vector<16x8xf32> to vector<8x8xf32>
    %77 = vector.extract_strided_slice %60 {offsets = [1, 0], sizes = [1, 8], strides = [1, 1]} : vector<5x8xf32> to vector<1x8xf32>
    %78 = vector.broadcast %77 : vector<1x8xf32> to vector<8x8xf32>
    %79 = arith.mulf %76, %78 : vector<8x8xf32>
    %80 = arith.addf %75, %79 : vector<8x8xf32>
    %81 = vector.extract_strided_slice %71 {offsets = [2, 0], sizes = [8, 8], strides = [1, 1]} : vector<16x8xf32> to vector<8x8xf32>
    %82 = vector.extract_strided_slice %60 {offsets = [2, 0], sizes = [1, 8], strides = [1, 1]} : vector<5x8xf32> to vector<1x8xf32>
    %83 = vector.broadcast %82 : vector<1x8xf32> to vector<8x8xf32>
    %84 = arith.mulf %81, %83 : vector<8x8xf32>
    %85 = arith.addf %80, %84 : vector<8x8xf32>
    %86 = vector.extract_strided_slice %71 {offsets = [3, 0], sizes = [8, 8], strides = [1, 1]} : vector<16x8xf32> to vector<8x8xf32>
    %87 = vector.extract_strided_slice %60 {offsets = [3, 0], sizes = [1, 8], strides = [1, 1]} : vector<5x8xf32> to vector<1x8xf32>
    %88 = vector.broadcast %87 : vector<1x8xf32> to vector<8x8xf32>
    %89 = arith.mulf %86, %88 : vector<8x8xf32>
    %90 = arith.addf %85, %89 : vector<8x8xf32>
    %91 = vector.extract_strided_slice %60 {offsets = [4, 0], sizes = [1, 8], strides = [1, 1]} : vector<5x8xf32> to vector<1x8xf32>
    %92 = vector.broadcast %91 : vector<1x8xf32> to vector<8x8xf32>
    %93 = arith.mulf %90, %92 : vector<8x8xf32>
    %cst_21 = arith.constant dense<0.000000e+00> : vector<8xf32>
    %94 = vector.multi_reduction <add>, %93, %cst_21 [1] : vector<8x8xf32> to vector<8xf32>
    %95 = vector.shape_cast %94 : vector<8xf32> to vector<8x1xf32>
    %cst_22 = arith.constant dense<0.000000e+00> : vector<8xf32>
    %96 = vector.multi_reduction <add>, %90, %cst_22 [1] : vector<8x8xf32> to vector<8xf32>
    %97 = vector.shape_cast %96 : vector<8xf32> to vector<8x1xf32>
    %98 = arith.subf %97, %95 : vector<8x1xf32>
    %99 = arith.minimumf %95, %98 : vector<8x1xf32>
    %cst_23 = arith.constant 2.500000e-01 : f32
    %100 = vector.broadcast %cst_23 : f32 to vector<8x1xf32>
    %101 = arith.mulf %99, %100 : vector<8x1xf32>
    %102 = vector.extract_strided_slice %57 {offsets = [0, 1], sizes = [8, 1], strides = [1, 1]} : vector<8x2xf32> to vector<8x1xf32>
    %103 = arith.mulf %101, %102 : vector<8x1xf32>
    %104 = arith.addf %59, %103 : vector<8x1xf32>
    %cst_24 = arith.constant dense<0.000000e+00> : vector<1xf32>
    %105 = vector.multi_reduction <add>, %104, %cst_24 [0] : vector<8x1xf32> to vector<1xf32>
    %106 = vector.shape_cast %105 : vector<1xf32> to vector<1x1xf32>
    %cst_25 = arith.constant 1.000000e+00 : f32
    %107 = vector.broadcast %cst_25 : f32 to vector<1x1xf32>
    %108 = arith.addf %107, %106 : vector<1x1xf32>
    %c0_26 = arith.constant 0 : index
    %c0_27 = arith.constant 0 : index
    %c0_28 = arith.constant 0 : index
    %109 = vector.load %arg5[%c0_26, %c0_27, %c0_28] : memref<1x1x1xf32, #tpu.memory_space<vmem>>, vector<1x1x1xf32>
    %110 = vector.shape_cast %109 : vector<1x1x1xf32> to vector<1x1xf32>
    %111 = vector.shape_cast %108 : vector<1x1xf32> to vector<1x1x1xf32>
    tpu.vector_store %arg5[%c0_26, %c0_27, %c0_28], %111 {strides = array<i32>} : memref<1x1x1xf32, #tpu.memory_space<vmem>>, vector<1x1x1xf32>,
    return
  }
  func.func @transform_0(%arg0: i32) -> (i32, i32, i32) {
    %c0_i32 = arith.constant 0 : i32
    %c0_i32_0 = arith.constant 0 : i32
    %c0_i32_1 = arith.constant 0 : i32
    return %arg0, %c0_i32, %c0_i32_0 : i32, i32, i32
  }
  func.func @transform_1(%arg0: i32) -> (i32, i32) {
    %c0_i32 = arith.constant 0 : i32
    %c0_i32_0 = arith.constant 0 : i32
    %c0_i32_1 = arith.constant 0 : i32
    return %c0_i32, %c0_i32_0 : i32, i32
  }
  func.func @transform_2(%arg0: i32) -> (i32, i32) {
    %c0_i32 = arith.constant 0 : i32
    %c0_i32_0 = arith.constant 0 : i32
    %c0_i32_1 = arith.constant 0 : i32
    return %c0_i32, %c0_i32_0 : i32, i32
  }
  func.func @transform_3(%arg0: i32) -> (i32, i32) {
    %c0_i32 = arith.constant 0 : i32
    %c0_i32_0 = arith.constant 0 : i32
    %c0_i32_1 = arith.constant 0 : i32
    return %c0_i32, %c0_i32_0 : i32, i32
  }
  func.func @transform_4(%arg0: i32) -> (i32, i32, i32) {
    %c0_i32 = arith.constant 0 : i32
    %c0_i32_0 = arith.constant 0 : i32
    %c0_i32_1 = arith.constant 0 : i32
    return %arg0, %c0_i32, %c0_i32_0 : i32, i32, i32
  }
}

</mosaic_0001>

<bundles_post_ra>
// kernel: tpu_custom_call.1
= control target key start
LH: loop header
LB: loop body
LE: loop exit
PB: predicated region body
PF: predicated region fallthrough
CT: control target
= control target key end

     0   :  { %v479_v2 = vmov 0   ;;  %s557_s0 = inlined_call_operand.vmem [shape: s32[1,16,3], index: 0, kind: input, shape index: {}]   ;;  %s558_s1 = inlined_call_operand.vmem [shape: f32[12,9], index: 1, kind: input, shape index: {}]   ;;  %s559_s2 = inlined_call_operand.vmem [shape: f32[5,8], index: 2, kind: input, shape index: {}]   ;;  %s560_s3 = inlined_call_operand.vmem [shape: f32[8,2], index: 3, kind: input, shape index: {}]   ;;  %s561_s4 = inlined_call_operand.hbm [shape: f32[1,1,1], index: 4, kind: output, shape index: {}]  }
   0x1   :  { %v21_v0 = vld [vmem:[%s557_s0 + $0x8] sm:$0xff]  ;;  %v20_v1 = vld [vmem:[%s557_s0] sm:$0xff]  ;;  %443 = vset.pattern.permute.xlu1 %v479_v2  ;;  %441 = vset.pattern.permute.xlu0 %v479_v2 }
   0x2   :  { %v34_v3 = vsub.s32 0, %v21_v0  ;;  %v23_v4 = vsub.s32 0, %v20_v1 }
   0x3   :  { %9 = vsyncpa [#allocation3], 0  ;;  %vm33_vm0 = vcmp.lt.s32.totalorder %v21_v0, 0  ;;  %vm22_vm1 = vcmp.lt.s32.totalorder %v20_v1, 0  ;;  %v480_v25 = vmov 1   ;;  %v18_v26 = vld [vmem:[%s558_s1] sm:$0xff]  ;;  %v54_v33 = vlaneseq }
   0x4   :  { %v386_v5 = vmin.u32 %v34_v3, %v21_v0  ;;  %v385_v6 = vmin.u32 %v23_v4, %v20_v1  ;;  %v19_v27 = vld [vmem:[%s558_s1 + $0x8] sm:$0xf]  ;;  %v481_v28 = vmov 2   ;;  %vm95_vm8 = vcmask 1043456   ;;  %s487_s24 = smov 8   ;;  %s488_s25 = smov 7  }
   0x5   :  { %v415_v29 = vpack.c.bf16 %v19_v27, %v18_v26  ;;  %vm482_vm9 = vmmov 1   ;;  %v483_v30 = vmov 0.0|0.0   ;;  %vm484_vm11 = vmmov 0   ;;  %s490_s26 = smov [#allocation2]  }
   0x6   :  { %v522_v7 = vmul.u32.u64.low 2863311531, %v386_v5  ;;  %v523_v8 = vmul.u32.u64.high 2863311531, %v386_v5, %v522_v7  ;;  %v525_v9 = vmul.u32.u64.low 2863311531, %v385_v6  ;;  %v526_v10 = vmul.u32.u64.high 2863311531, %v385_v6, %v525_v9  ;;  %vm416_vm10 = vmpackc.low %vm95_vm8, %vm482_vm9  ;;  %421 = vmatprep.subr.bf16.mxu1 %v483_v30  ;;  %s377_s27 = sshll.u32 %s490_s26, 4  ;;  %s378_s27 = int_to_ptr.vmem [resolvable:$true] %s377_s27 }
   0x7   :  { %417 = vmatprep.subr.msk.bf16.mxu0 %vm416_vm10, %v415_v29  ;;  %424 = vmatpush3.bf16.msk.msra.mxu1 %vm416_vm10, %v415_v29  ;;  %v485_v31 = vmov 0.0   ;;  %v55_v35 = vand.u32 127, %v54_v33  ;;  %v486_v43 = vmov 8   ;;  %v289_v1 = vshrl.u32 %v54_v33, 7  ;;  %s455_s28 = scalar_lea.vmem %s378_s27, 16  ;;  %s459_s29 = scalar_lea.vmem %s378_s27, 32 }
   0x8   :  { %v39_v11 = vshrl.u32 %v523_v8, 3  ;;  %v28_v12 = vshrl.u32 %v526_v10, 3  ;;  %420 = vmatpush3.bf16.msk.msra.mxu0 %vm416_vm10, %v415_v29  ;;  %412 = vmatprep.mubr.msk.f32.mxu1 %vm484_vm11, %v485_v31  ;;  %vm315_vm8 = vcmask 1045504   ;;  %vm329_vm9 = vcmask 1044480   ;;  %p456_p0 = scmp.ne.s32.totalorder %s378_s27, %s455_s28  ;;  %p460_p1 = scmp.lt.s32.totalorder %s378_s27, %s378_s27 }
   0x9   :  { %v290_v2 = vsub.s32 0, %v289_v1  ;;  %v295_v3 = vsub.s32 1, %v289_v1  ;;  %v309_v4 = vsub.s32 2, %v289_v1  ;;  %v337_v30 = vsub.s32 4, %v289_v1  ;;  %p461_p2 = scmp.lt.s32.totalorder %s459_s29, %s455_s28 }
   0xa   :  { %v40_v13 = vmul.u32 12, %v39_v11  ;;  %v29_v14 = vmul.u32 12, %v28_v12  ;;  %vm340_vm10 = vcmask 64512   ;;  %vm356_vm11 = vcmask 72768  }
   0xb   :  { %p462_p3 = por %p461_p2, %p460_p1 }
   0xc   :  { %v41_v15 = vsub.s32 %v386_v5, %v40_v13  ;;  %v30_v16 = vsub.s32 %v385_v6, %v29_v14  ;;  %v265_v5 = vld [vmem:[%s559_s2] sm:$0x1f]  ;;  %v323_v6 = vsub.s32 3, %v289_v1 }
   0xd   :  { %v291_v9 = vrot.slane %v265_v5, %v290_v2  ;;  %v296_v10 = vrot.slane %v265_v5, %v295_v3  ;;  %v310_v11 = vrot.slane %v265_v5, %v309_v4  ;;  %p463_p4 = pnand %p462_p3, %p456_p0 }
   0xe   :  { %v42_v17 = vsub.s32 0, %v41_v15  ;;  %v31_v18 = vsub.s32 0, %v30_v16  ;;  %v324_v12 = vrot.slane %v265_v5, %v323_v6 }
  0x10   :  { %v43_v19 = vsel %vm33_vm0, %v42_v17, %v41_v15  ;;  %v32_v20 = vsel %vm22_vm1, %v31_v18, %v30_v16 }
  0x11   :  { %vm45_vm2 = vcmp.ne.s32.totalorder %v43_v19, 0  ;;  %vm47_vm3 = vcmp.lt.s32.totalorder %v43_v19, 0  ;;  %v51_v21 = vadd.s32 12, %v43_v19  ;;  %vm44_vm4 = vcmp.ne.s32.totalorder %v32_v20, 0 }
  0x12   :  { %vm49_vm5 = vmand %vm47_vm3, %vm45_vm2  ;;  %vm46_vm6 = vcmp.lt.s32.totalorder %v32_v20, 0  ;;  %v50_v22 = vadd.s32 12, %v32_v20  ;;  %vm88_vm3 = vcmask 97280  }
  0x13   :  { %v53_v23 = vsel %vm49_vm5, %v51_v21, %v43_v19  ;;  %vm48_vm7 = vmand %vm46_vm6, %vm44_vm4 }
  0x14   :  { %60 = vperm.xlu1 %443, %v53_v23   ;;  %v52_v24 = vsel %vm48_vm7, %v50_v22, %v32_v20  ;;  %vm301_vm7 = vcmask 1046528  }
  0x15   :  { %57 = vperm.xlu0 %441, %v52_v24  }
  0x18   :  { %444 = vset.pattern.permute.xlu1 %v480_v25 }
  0x19   :  { %442 = vset.pattern.permute.xlu0 %v480_v25  ;;  %68 = vperm.xlu1 %444, %v53_v23  }
  0x1a   :  { %65 = vperm.xlu0 %442, %v52_v24  }
  0x1d   :  { %445 = vset.pattern.permute.xlu1 %v481_v28 }
  0x1e   :  { %446 = vset.pattern.permute.xlu0 %v481_v28  ;;  %75 = vperm.xlu1 %445, %v52_v24  }
  0x1f   :  { %78 = vperm.xlu0 %446, %v53_v23  }
  0x22   :  { %447 = vset.pattern.permute.xlu1 %v486_v43 }
  0x23   :  { %448 = vset.pattern.permute.xlu0 %v486_v43 }
  0x93   :  { %v61_v32 = vpop.permute.xlu1 %60 }
  0x94   :  { %v58_v34 = vpop.permute.xlu0 %57  ;;  %vm63_vm14 = vcmp.eq.s32.totalorder %v61_v32, %v55_v35 }
  0x95   :  { %vm62_vm15 = vcmp.eq.s32.totalorder %v58_v34, %v55_v35 }
  0x98   :  { %v69_v36 = vpop.permute.xlu1 %68 }
  0x99   :  { %v66_v37 = vpop.permute.xlu0 %65  ;;  %vm71_vm12 = vcmp.eq.s32.totalorder %v69_v36, %v55_v35  ;;  %v338_v36 = vrot.slane %v265_v5, %v337_v30 }
  0x9a   :  { %vm70_vm13 = vcmp.eq.s32.totalorder %v66_v37, %v55_v35  ;;  %vm73_vm0 = vmor %vm63_vm14, %vm71_vm12  ;;  %vm369_vm12 = vcmask 0  }
  0x9b   :  { %vm72_vm1 = vmor %vm62_vm15, %vm70_vm13 }
  0x9d   :  { %v76_v38 = vpop.permute.xlu1 %75 }
  0x9e   :  { %vm80_vm2 = vcmp.eq.s32.totalorder %v76_v38, %v55_v35  ;;  %v79_v39 = vpop.permute.xlu0 %78 }
  0x9f   :  { %vm81_vm4 = vcmp.eq.s32.totalorder %v79_v39, %v55_v35  ;;  %vm82_vm5 = vmor %vm72_vm1, %vm80_vm2 }
  0xa0   :  { %vm83_vm6 = vmor %vm73_vm0, %vm81_vm4  ;;  %v387_v40 = vsel %vm82_vm5, 1.0, %v485_v31 }
  0xa1   :  { %v388_v41 = vsel %vm83_vm6, 1.0, %v485_v31  ;;  %405 = vmatprep.mubr.msk.f32.mxu0 %vm88_vm3, %v387_v40 }
  0xa2   :  { %v174_v42 = vmul.f32 %v388_v41, %v387_v40  ;;  %406 = vmatmul.mubr.msk.f32.vlgmr.msra.gmra.mrb[0].mxu0 %vm88_vm3, %v388_v41  ;;  %v259_v41 = vld [vmem:[%s560_s3] sm:$0xff]  ;;  %s489_s3 = smov 120  }
  0xa4   :  { %413 = vmatmul.mubr.msk.f32.vlgmr.msra.gmra.mrb[0].mxu1 %vm88_vm3, %v174_v42 }
 0x175   :  { %v407_v44 = vpop.f32.mrb[0].mxu0 }
 0x176   :  { %v253_v45 = vadd.f32 1.2e-05, %v407_v44  ;;  %v165_v46 = vpop.f32.mrb[1].mxu0  ;;  %v267_v55 = vadd.f32 3.0, %v407_v44 }
 0x177   :  { %v252_v47 = vadd.f32 1.2e-05, %v165_v46  ;;  %v244_v48 = vpop.f32.mrb[0].mxu1  ;;  %v248_v49 = vadd.f32 %v407_v44, %v165_v46  ;;  %v266_v50 = vadd.f32 3.0, %v165_v46 }
 0x178   :  { %v414_v51 = vpop.f32.mrb[1].mxu1 }
 0x179   :  { %v254_v52 = vmul.f32 %v253_v45, %v252_v47  ;;  %v249_v53 = vmul.f32 1e-06, %v248_v49  ;;  %270 = vperm.xlu1 %447, %v266_v50  }
 0x17b   :  { %449 = vrcp.f32 %v254_v52  ;;  %v250_v54 = vadd.f32 %v249_v53, %v244_v48 }
 0x17d   :  { %275 = vperm.xlu1 %447, %v267_v55   ;;  %v251_v56 = vadd.f32 1.2e-11, %v250_v54 }
 0x185   :  { %v450_v57 = vpop.eup %449 }
 0x186   :  { %v536_v58 = vmul.f32 %v450_v57, %v251_v56 }
 0x188   :  { %v257_v48 = vmax.f32 %v536_v58, 0.0 }
 0x18a   :  { %v258_v50 = vmin.f32 %v257_v48, 1.0 }
 0x1f8   :  { %v271_v59 = vpop.permute.xlu1 %270 }
 0x1f9   :  { %v278_v60 = vsub.f32 %v271_v59, %v165_v46 }
 0x1fb   :  { %v280_v61 = vadd.f32 1e-08, %v278_v60 }
 0x1fc   :  { %v276_v62 = vpop.permute.xlu1 %275 }
 0x1fd   :  { %451 = vrcp.f32 %v280_v61  ;;  %v279_v63 = vsub.f32 %v276_v62, %v407_v44 }
 0x1ff   :  { %v281_v0 = vadd.f32 1e-08, %v279_v63 }
 0x201   :  { %453 = vrcp.f32 %v281_v0 }
 0x207   :  { %v452_v7 = vpop.eup %451 }
 0x208   :  { %v283_v8 = vmul.f32 %v452_v7, %v165_v46 }
 0x20a   :  { %v286_v13 = vsub.f32 1.0, %v283_v8 }
 0x20b   :  { %v454_v14 = vpop.eup %453 }
 0x20c   :  { %v285_v15 = vmul.f32 %v454_v14, %v407_v44  ;;  %v292_v16 = vmul.f32 %v291_v9, %v286_v13  ;;  %v297_v17 = vmul.f32 %v296_v10, %v286_v13  ;;  %v311_v18 = vmul.f32 %v310_v11, %v286_v13 }
 0x20d   :  { %v325_v19 = vmul.f32 %v324_v12, %v286_v13 }
 0x20e   :  { %v287_v20 = vsub.f32 1.0, %v285_v15  ;;  %v302_v24 = vrot.slane %v297_v17, 1  ;;  %v316_v25 = vrot.slane %v311_v18, 2 }
 0x20f   :  { %v330_v28 = vrot.slane %v325_v19, 3 }
 0x210   :  { %v298_v21 = vmul.f32 %v296_v10, %v287_v20  ;;  %v312_v22 = vmul.f32 %v310_v11, %v287_v20  ;;  %v326_v23 = vmul.f32 %v324_v12, %v287_v20 }
 0x212   :  { %v303_v26 = vrot.slane %v298_v21, 1  ;;  %v317_v27 = vrot.slane %v312_v22, 2  ;;  %v331_v29 = vrot.slane %v326_v23, 3 }
 0x214   :  { %v304_v31 = vsel %vm301_vm7, %v302_v24, %v303_v26  ;;  %v318_v32 = vsel %vm315_vm8, %v316_v25, %v317_v27  ;;  %v332_v33 = vsel %vm329_vm9, %v330_v28, %v331_v29 }
 0x215   :  { %v306_v34 = vadd.f32 %v304_v31, %v292_v16 }
 0x217   :  { %v320_v35 = vadd.f32 %v318_v32, %v306_v34 }
 0x219   :  { %v334_v37 = vadd.f32 %v332_v33, %v320_v35 }
 0x21b   :  { %v344_v38 = vsel %vm340_vm10, %v334_v37, 0.0  ;;  %v339_v39 = vmul.f32 %v338_v36, %v334_v37 }
 0x21c   :  { %345 = vadd.xlane.f32.xlu1 %v344_v38 }
 0x21d   :  { %v341_v40 = vsel %vm340_vm10, %v339_v39, 0.0 }
 0x21e   :  { %342 = vadd.xlane.f32.xlu0 %v341_v40 }
 0x234   :  { %261 = vrot.lane.b32.xlu0 %v259_v41, %s487_s24 }
 0x2a9   :  { %v346_v42 = vpop.xlane.xlu1 %345 }
 0x2ab   :  { %v343_v43 = vpop.xlane.xlu0 %342 }
 0x2ac   :  { %v347_v44 = vsub.f32 %v346_v42, %v343_v43 }
 0x2ae   :  { %v348_v45 = vmin.f32 %v343_v43, %v347_v44 }
 0x2af   :  { %v262_v49 = vpop.permute.xlu0 %261 }
 0x2b0   :  { %v349_v46 = vmul.f32 0.25, %v348_v45  ;;  %v264_v51 = vmul.f32 %v262_v49, %v258_v50 }
 0x2b2   :  { %v350_v47 = vmul.f32 %v349_v46, %v259_v41 }
 0x2b4   :  { %352 = vrot.lane.b32.xlu1 %v350_v47, %s488_s25 }
 0x326   :  { %v353_v52 = vpop.permute.xlu1 %352 }
 0x327   :  { %v355_v53 = vadd.f32 %v353_v52, %v264_v51 }
 0x329   :  { %v357_v54 = vsel %vm356_vm11, %v355_v53, 0.0 }
 0x32a   :  { %v358_v55 = vrot.slane %v357_v54, 4 }
 0x32c   :  { %v359_v56 = vadd.f32 %v358_v55, %v357_v54 }
 0x32e   :  { %v360_v57 = vrot.slane %v359_v56, 2 }
 0x330   :  { %v361_v59 = vadd.f32 %v360_v57, %v359_v56 }
 0x332   :  { %v362_v60 = vrot.slane %v361_v59, 1 }
 0x334   :  { %v363_v61 = vadd.f32 %v362_v60, %v361_v59 }
 0x336   :  { %v364_v62 = vadd.f32 1.0, %v363_v61 }
 0x338   :  { %366 = vrot.lane.b32.xlu0 %v364_v62, %s489_s3 }
 0x3aa   :  { %v367_v58 = vpop.permute.xlu0 %366 }
 0x3ab   :  { %370 = vst.msk [vmem:[#allocation2] sm:$0x1] %vm369_vm12, %v367_v58 }
 0x3ac   :  { %466 = shalt.err (!%p463_p4)
}
 0x3ad   :  { %s467_s6 = scalar_lea.hbm %s561_s4, 16 }
 0x3ae   :  { %p468_p5 = scmp.ne.s32.totalorder %s561_s4, %s467_s6  ;;  %p471_p6 = scmp.lt.u32.totalorder %s467_s6, %s561_s4 }
 0x3b0   :  { %p473_p7 = pnand %p471_p6, %p468_p5 }
 0x3b2   :  { %476 = shalt.err (!%p473_p7)
}
 0x3b3   :  { %380 = dma.vmem_to_hbm [thread:$0]  %s378_s27, 16, %s561_s4, [#allocation3]  }
 0x3b4   :  { %477 = dma.done.wait [#allocation3], 16  }
 0x3b5   :  { %478 = vsyncadd [#allocation3], 4294967280 }
 0x3b6   :  { %384 = vsyncpa [#allocation3], 1 }

</bundles_post_ra>
